<compile_context>
chip_gen: v7x
topology: tpu7x:2x2x1
jax: 0.10.0
libtpu: 0.0.40
codegen_flags: <defaults>
</compile_context>

<pallas_src>
import math
import functools

import jax
import jax.numpy as jnp
from jax.experimental import pallas as pl
from jax.experimental.pallas import tpu as pltpu


def _round_up(x, m):
    return ((x + m - 1) // m) * m


def _pick_tile(padded, align, cap):
    """Largest divisor of `padded` that is a multiple of `align` and <= cap."""
    q = padded // align
    best = align
    for d in range(1, q + 1):
        if q % d == 0 and align * d <= cap:
            best = align * d
    return best


def _sublane_align(dtype):
    return {4: 8, 2: 16, 1: 32}.get(jnp.dtype(dtype).itemsize, 8)


def _linear_kernel(*refs, has_bias, use_scratch):
    """Tiled (i, j, k) linear kernel: o = x @ w_t (+ bias).

    refs layout: x_ref, w_ref, [b_ref], o_ref, [acc_ref]
      x_ref: (bm, bk)   w_ref: (bk, bn)  (weight already (K, N), mask folded)
      b_ref: (1, bn) f32
      o_ref: (bm, bn)   acc_ref: (bm, bn) f32 (only when out dtype != f32)
    """
    x_ref = refs[0]
    w_ref = refs[1]
    idx = 2
    b_ref = None
    if has_bias:
        b_ref = refs[idx]
        idx += 1
    o_ref = refs[idx]
    idx += 1
    acc_ref = refs[idx] if use_scratch else o_ref  # accumulate in-place when f32 out

    k = pl.program_id(2)

    @pl.when(k == 0)
    def _init():
        if has_bias:
            acc_ref[...] = jnp.broadcast_to(b_ref[...], acc_ref.shape)
        else:
            acc_ref[...] = jnp.zeros_like(acc_ref)

    acc_ref[...] += jnp.dot(x_ref[...], w_ref[...],
                            preferred_element_type=jnp.float32)

    if use_scratch:
        @pl.when(k == pl.num_programs(2) - 1)
        def _finalize():
            o_ref[...] = acc_ref[...].astype(o_ref.dtype)


def prepare_masked_linear(weight, mask, bias, *, training=True, compute_dtype=None):
    """One-time (per step) parameter transform: (K_pad, N_pad) weight, f32 bias.

    Folds the mask into the weight when training so the kernel never streams it.
    """
    N, K = weight.shape
    cdt = weight.dtype if compute_dtype is None else compute_dtype
    w_eff = weight * mask if (training and mask is not None) else weight

    K_pad = _round_up(K, 128)
    N_pad = _round_up(N, 128)
    w_t = jnp.pad(w_eff.T.astype(cdt), ((0, K_pad - K), (0, N_pad - N)))

    if bias is None:
        b_p = None
    else:
        b_p = jnp.pad(bias.astype(jnp.float32), (0, N_pad - N)).reshape(1, N_pad)

    return {"w_t": w_t, "b_p": b_p, "N": N, "K": K, "cdt": cdt}


def masked_linear_apply(x, params, *, bm=None, bn=None, bk=None, weight_buffers=None):
    """Run the kernel with pre-transformed params (see prepare_masked_linear)."""
    B, K = x.shape
    assert K == params["K"], "in_features mismatch"
    w_t, b_p, cdt, N = params["w_t"], params["b_p"], params["cdt"], params["N"]
    K_pad, N_pad = w_t.shape
    out_dtype = x.dtype

    itemsize = jnp.dtype(cdt).itemsize
    m_align = _sublane_align(cdt)
    M_pad = _round_up(B, m_align)

    # Tiles are divisors of the aligned padded sizes -> zero wasted blocks.
    if bm is None:
        bm = _pick_tile(M_pad, m_align, 512)
    if bn is None:
        bn = _pick_tile(N_pad, 128, 512)
        # v7x megacore: make sure the parallel axes produce >= 2 blocks.
        if (M_pad // bm) == 1 and (N_pad // bn) < 2 and N_pad >= 256:
            bn = _pick_tile(N_pad, 128, max(128, bn // 2))
    if bk is None:
        bk = _pick_tile(K_pad, 128, 1024)

    x_p = jnp.pad(x.astype(cdt), ((0, M_pad - B), (0, K_pad - K)))

    grid = (M_pad // bm, N_pad // bn, K_pad // bk)
    has_bias = b_p is not None
    use_scratch = jnp.dtype(out_dtype) != jnp.dtype(jnp.float32)

    x_spec = pl.BlockSpec((bm, bk), lambda i, j, k: (i, k))
    w_spec_kwargs = {}
    if weight_buffers is not None:
        w_spec_kwargs["pipeline_mode"] = pl.Buffered(weight_buffers)
    w_spec = pl.BlockSpec((bk, bn), lambda i, j, k: (k, j), **w_spec_kwargs)
    o_spec = pl.BlockSpec((bm, bn), lambda i, j, k: (i, j))

    in_specs = [x_spec, w_spec]
    inputs = [x_p, w_t]
    if has_bias:
        in_specs.append(pl.BlockSpec((1, bn), lambda i, j, k: (0, j)))
        inputs.append(b_p)

    scratch_shapes = [pltpu.VMEM((bm, bn), jnp.float32)] if use_scratch else []

    # VMEM estimate: double-buffered x/w tiles + output tiles (+ acc + bias).
    est = 2 * (bm * bk + bk * bn) * itemsize
    est += 2 * bm * bn * jnp.dtype(out_dtype).itemsize
    if use_scratch:
        est += bm * bn * 4
    if has_bias:
        est += 2 * bn * 4
    vmem_limit = int(min(48 * 1024 * 1024,                       # v7x-safe ceiling
                         max(32 * 1024 * 1024, est + 4 * 1024 * 1024)))

    kernel = functools.partial(_linear_kernel,
                               has_bias=has_bias, use_scratch=use_scratch)

    out = pl.pallas_call(
        kernel,
        out_shape=jax.ShapeDtypeStruct((M_pad, N_pad), out_dtype),
        grid=grid,
        in_specs=in_specs,
        out_specs=o_spec,
        scratch_shapes=scratch_shapes,
        compiler_params=pltpu.CompilerParams(
            dimension_semantics=("parallel", "parallel", "arbitrary"),
            vmem_limit_bytes=vmem_limit,
        ),
    )(*inputs)

    return out[:B, :N]


def masked_linear(x, weight, mask, bias, *, training=True, compute_dtype=None,
                  **tile_kwargs):
    """Convenience one-shot wrapper (prepare + apply). For repeated forwards,
    call prepare_masked_linear() once and masked_linear_apply() per batch."""
    params = prepare_masked_linear(weight, mask, bias, training=training,
                                   compute_dtype=compute_dtype)
    return masked_linear_apply(x, params, **tile_kwargs)


# ----------------------------------------------------------------------------
# Self-test
# ----------------------------------------------------------------------------
def _make_layer(key, in_features, out_features, with_bias=True):
    kw, kb = jax.random.split(key)
    stdv = 1.0 / math.sqrt(in_features)
    weight = jax.random.uniform(kw, (out_features, in_features),
                                jnp.float32, -stdv, stdv)
    bias = (jax.random.uniform(kb, (out_features,), jnp.float32, -stdv, stdv)
            if with_bias else None)
    # emulate prune(threshold): zero out small weights, record the mask
    threshold = 0.5 * stdv
    mask = jnp.where(jnp.abs(weight) < threshold, 0.0, 1.0).astype(jnp.float32)
    weight = weight * mask
    return weight, mask, bias


def _ref_linear(x, weight, mask, bias, training):
    w = weight * mask if training else weight
    y = jnp.dot(x, w.T, precision=jax.lax.Precision.HIGHEST)
    if bias is not None:
        y = y + bias
    return y


if __name__ == "__main__":
    key = jax.random.PRNGKey(0)
    k1, k2, k3, kx1, kx2, kx3 = jax.random.split(key, 6)

    # --- case 1: module toy shape (batch=8, in=32, out=32), f32 ---------------
    w1, m1, b1 = _make_layer(k1, 32, 32)
    x1 = jax.random.normal(kx1, (8, 32), jnp.float32)

    y1_tr = masked_linear(x1, w1, m1, b1, training=True)
    y1_ev = masked_linear(x1, w1, m1, b1, training=False)
    jax.block_until_ready((y1_tr, y1_ev))
    assert jnp.allclose(y1_tr, _ref_linear(x1, w1, m1, b1, True), atol=1e-5, rtol=1e-5)
    assert jnp.allclose(y1_ev, _ref_linear(x1, w1, m1, b1, False), atol=1e-5, rtol=1e-5)

    # --- case 2: non-128-multiple dims, prepared params reused (hoisted xform)
    w2, m2, b2 = _make_layer(k2, 320, 192)           # K_pad=384, N_pad=256
    x2a = jax.random.normal(kx2, (16, 320), jnp.float32)
    x2b = jax.random.normal(kx3, (16, 320), jnp.float32)

    p2_tr = prepare_masked_linear(w2, m2, b2, training=True)
    p2_ev = prepare_masked_linear(w2, m2, b2, training=False)
    y2a = masked_linear_apply(x2a, p2_tr)
    y2b = masked_linear_apply(x2b, p2_tr)            # reuse prepared weights
    y2e = masked_linear_apply(x2a, p2_ev)
    jax.block_until_ready((y2a, y2b, y2e))
    assert jnp.allclose(y2a, _ref_linear(x2a, w2, m2, b2, True), atol=1e-4, rtol=1e-4)
    assert jnp.allclose(y2b, _ref_linear(x2b, w2, m2, b2, True), atol=1e-4, rtol=1e-4)
    assert jnp.allclose(y2e, _ref_linear(x2a, w2, m2, b2, False), atol=1e-4, rtol=1e-4)

    # --- case 3: bf16 operands (v6e/v7x fast path), f32 accumulation ----------
    y3 = masked_linear(x2a, w2, m2, b2, training=True, compute_dtype=jnp.bfloat16)
    jax.block_until_ready(y3)
    assert jnp.allclose(y3, _ref_linear(x2a, w2, m2, b2, True), atol=5e-2, rtol=5e-2)

    # --- case 4: no bias -------------------------------------------------------
    w4, m4, b4 = _make_layer(k3, 64, 48, with_bias=False)
    x4 = jax.random.normal(kx1, (4, 64), jnp.float32)
    y4 = masked_linear(x4, w4, m4, b4, training=True)
    jax.block_until_ready(y4)
    assert jnp.allclose(y4, _ref_linear(x4, w4, m4, None, True), atol=1e-5, rtol=1e-5)

    print("KERNEL_OK")
</pallas_src>

<mosaic_0001>
module attributes {stable_mosaic.version = 11 : i64} {
  func.func @_linear_kernel(%arg0: i32, %arg1: i32, %arg2: i32, %arg3: memref<8x128xf32, #tpu.memory_space<vmem>>, %arg4: memref<128x128xf32, #tpu.memory_space<vmem>>, %arg5: memref<1x128xf32, #tpu.memory_space<vmem>>, %arg6: memref<8x128xf32, #tpu.memory_space<vmem>>) attributes {dimension_semantics = [#tpu.dimension_semantics<parallel>, #tpu.dimension_semantics<parallel>, #tpu.dimension_semantics<arbitrary>], iteration_bounds = array<i64: 1, 1, 1>, scalar_prefetch = 0 : i64, scratch_operands = 0 : i64, tpu.core_type = #tpu.core_type<tc>, window_params = [{transform_indices = @transform_0, window_bounds = array<i64: 8, 128>}, {transform_indices = @transform_1, window_bounds = array<i64: 128, 128>}, {transform_indices = @transform_2, window_bounds = array<i64: 1, 128>}, {transform_indices = @transform_3, window_bounds = array<i64: 8, 128>}]} {
    %c0_i32 = arith.constant 0 : i32
    %0 = arith.cmpi eq, %arg2, %c0_i32 : i32
    %1 = arith.extui %0 : i1 to i32
    %c0_i32_0 = arith.constant 0 : i32
    %2 = arith.cmpi ne, %1, %c0_i32_0 : i32
    scf.if %2 {
      %c0_8 = arith.constant 0 : index
      %c0_9 = arith.constant 0 : index
      %9 = vector.load %arg5[%c0_8, %c0_9] : memref<1x128xf32, #tpu.memory_space<vmem>>, vector<1x128xf32>
      %10 = vector.shape_cast %9 : vector<1x128xf32> to vector<1x128xf32>
      %11 = vector.broadcast %10 : vector<1x128xf32> to vector<8x128xf32>
      %c0_10 = arith.constant 0 : index
      %c0_11 = arith.constant 0 : index
      %12 = vector.load %arg6[%c0_10, %c0_11] : memref<8x128xf32, #tpu.memory_space<vmem>>, vector<8x128xf32>
      tpu.vector_store %arg6[%c0_10, %c0_11], %11 {strides = array<i32>} : memref<8x128xf32, #tpu.memory_space<vmem>>, vector<8x128xf32>,
    } else {
    }
    %c0 = arith.constant 0 : index
    %c0_1 = arith.constant 0 : index
    %3 = vector.load %arg6[%c0, %c0_1] : memref<8x128xf32, #tpu.memory_space<vmem>>, vector<8x128xf32>
    %c0_2 = arith.constant 0 : index
    %c0_3 = arith.constant 0 : index
    %4 = vector.load %arg3[%c0_2, %c0_3] : memref<8x128xf32, #tpu.memory_space<vmem>>, vector<8x128xf32>
    %c0_4 = arith.constant 0 : index
    %c0_5 = arith.constant 0 : index
    %5 = vector.load %arg4[%c0_4, %c0_5] : memref<128x128xf32, #tpu.memory_space<vmem>>, vector<128x128xf32>
    %cst = arith.constant dense<0.000000e+00> : vector<8x128xf32>
    %6 = tpu.matmul %4, %5, %cst {dimension_numbers = #tpu.dot_dimension_numbers<[1], [0], [0], [1], [0, 0, 1, 1], [], []>} : vector<8x128xf32>, vector<128x128xf32>, vector<8x128xf32> -> vector<8x128xf32>
    %7 = arith.addf %3, %6 : vector<8x128xf32>
    %c0_6 = arith.constant 0 : index
    %c0_7 = arith.constant 0 : index
    %8 = vector.load %arg6[%c0_6, %c0_7] : memref<8x128xf32, #tpu.memory_space<vmem>>, vector<8x128xf32>
    tpu.vector_store %arg6[%c0_6, %c0_7], %7 {strides = array<i32>} : memref<8x128xf32, #tpu.memory_space<vmem>>, vector<8x128xf32>,
    return
  }
  func.func @transform_0(%arg0: i32, %arg1: i32, %arg2: i32) -> (i32, i32) {
    %c0_i32 = arith.constant 0 : i32
    return %arg0, %arg2 : i32, i32
  }
  func.func @transform_1(%arg0: i32, %arg1: i32, %arg2: i32) -> (i32, i32) {
    %c0_i32 = arith.constant 0 : i32
    return %arg2, %arg1 : i32, i32
  }
  func.func @transform_2(%arg0: i32, %arg1: i32, %arg2: i32) -> (i32, i32) {
    %c0_i32 = arith.constant 0 : i32
    %c0_i32_0 = arith.constant 0 : i32
    return %c0_i32, %arg1 : i32, i32
  }
  func.func @transform_3(%arg0: i32, %arg1: i32, %arg2: i32) -> (i32, i32) {
    %c0_i32 = arith.constant 0 : i32
    return %arg0, %arg1 : i32, i32
  }
}

</mosaic_0001>

<bundles_post_ra>
// kernel: tpu_custom_call.1
= control target key start
LH: loop header
LB: loop body
LE: loop exit
PB: predicated region body
PF: predicated region fallthrough
CT: control target
= control target key end

     0   :  { %8 = vsyncpa [#allocation3], 0  ;;  %s390_s0 = inlined_call_operand.hbm [shape: f32[8,128], index: 0, kind: input, shape index: {}]   ;;  %s391_s1 = inlined_call_operand.hbm [shape: f32[128,128], index: 1, kind: input, shape index: {}]   ;;  %s392_s2 = inlined_call_operand.vmem [shape: f32[1,128], index: 2, kind: input, shape index: {}]   ;;  %s393_s3 = inlined_call_operand.hbm [shape: f32[8,128], index: 3, kind: output, shape index: {}]  }
   0x1   :  { %9 = vsyncpa [#allocation6], 0 }
   0x2   :  { %10 = vsyncpa [#allocation4], 0  ;;  %s316_s12 = smov [#allocation2]   ;;  %s317_s14 = smov [#allocation5]  }
   0x3   :  { %s17_s13 = sshll.u32 %s316_s12, 4  ;;  %s26_s15 = sshll.u32 %s317_s14, 4  ;;  %s18_s13 = int_to_ptr.vmem [resolvable:$true] %s17_s13  ;;  %s344_s15 = int_to_ptr.vmem [resolvable:$true] %s26_s15 }
   0x4   :  { %s244_s18 = scalar_lea.hbm %s390_s0, 128 }
   0x5   :  { %p245_p0 = scmp.ne.s32.totalorder %s390_s0, %s244_s18  ;;  %p248_p1 = scmp.lt.u32.totalorder %s244_s18, %s390_s0 }
   0x7   :  { %p250_p2 = pnand %p248_p1, %p245_p0 }
   0x9   :  { %253 = shalt.err (!%p250_p2)
}
   0xa   :  { %s254_s23 = scalar_lea.vmem %s18_s13, 128  ;;  %p259_p4 = scmp.lt.s32.totalorder %s18_s13, %s18_s13 }
   0xb   :  { %p255_p3 = scmp.ne.s32.totalorder %s18_s13, %s254_s23  ;;  %p260_p5 = scmp.lt.s32.totalorder %s254_s23, %s254_s23 }
   0xd   :  { %p261_p6 = por %p260_p5, %p259_p4 }
   0xf   :  { %p262_p7 = pnand %p261_p6, %p255_p3 }
  0x11   :  { %265 = shalt.err (!%p262_p7)
}
  0x12   :  { %20 = dma.hbm_to_vmem [thread:$0]  %s390_s0, 128, %s18_s13, [#allocation3]  }
  0x13   :  { %s266_s28 = scalar_lea.hbm %s391_s1, 2048 }
  0x14   :  { %p267_p8 = scmp.ne.s32.totalorder %s391_s1, %s266_s28  ;;  %p270_p9 = scmp.lt.u32.totalorder %s266_s28, %s391_s1 }
  0x16   :  { %p272_p10 = pnand %p270_p9, %p267_p8 }
  0x18   :  { %275 = shalt.err (!%p272_p10)
}
  0x19   :  { %s276_s6 = scalar_lea.vmem %s344_s15, 2048  ;;  %p281_p12 = scmp.lt.s32.totalorder %s344_s15, %s344_s15 }
  0x1a   :  { %p277_p11 = scmp.ne.s32.totalorder %s344_s15, %s276_s6  ;;  %p282_p13 = scmp.lt.s32.totalorder %s276_s6, %s276_s6 }
  0x1c   :  { %p283_p0 = por %p282_p13, %p281_p12 }
  0x1e   :  { %p284_p1 = pnand %p283_p0, %p277_p11 }
  0x20   :  { %287 = shalt.err (!%p284_p1)
}
  0x21   :  { %s318_s0 = smov 128   ;;  %s319_s7 = smov 8  }
  0x22   :  { %32 = dma.hbm_to_vmem [thread:$0]  %s391_s1, 2048, %s344_s15, [#allocation6], %s318_s0, %s318_s0, %s319_s7  }
  0x23   :  { %310 = dma.done.wait [#allocation3], 128  }
  0x24   :  { %311 = vsyncadd [#allocation3], 4294967168 }
  0x25   :  { %312 = dma.done.wait [#allocation6], 2048  }
  0x26   :  { %313 = vsyncadd [#allocation6], 4294965248  ;;  %v320_v0 = vmov 0.0|0.0   ;;  %vm321_vm0 = vmmov 0   ;;  %v322_v1 = vmov 0.0   ;;  %v55_v2 = vld [vmem:[#allocation5] sm:$0xff] }
  0x27   :  { %212 = vmatprep.subr.bf16.mxu0 %v320_v0  ;;  %209 = vmatprep.mubr.msk.f32.mxu0 %vm321_vm0, %v322_v1  ;;  %v56_v3 = vld [vmem:[#allocation5 + $0x8] sm:$0xff]  ;;  %v57_v4 = vld [vmem:[#allocation5 + $0x10] sm:$0xff]  ;;  %v58_v6 = vld [vmem:[#allocation5 + $0x18] sm:$0xff]  ;;  %s323_s11 = smov [#allocation7]  }
  0x28   :  { %v213_v5 = vpack.c.bf16 %v56_v3, %v55_v2  ;;  %v216_v7 = vpack.c.bf16 %v58_v6, %v57_v4  ;;  %v59_v8 = vld [vmem:[#allocation5 + $0x20] sm:$0xff]  ;;  %v60_v9 = vld [vmem:[#allocation5 + $0x28] sm:$0xff]  ;;  %v61_v11 = vld [vmem:[#allocation5 + $0x30] sm:$0xff]  ;;  %s149_s12 = sshll.u32 %s323_s11, 4  ;;  %s150_s12 = int_to_ptr.vmem [resolvable:$true] %s149_s12 }
  0x29   :  { %v219_v10 = vpack.c.bf16 %v60_v9, %v59_v8  ;;  %v62_v12 = vld [vmem:[#allocation5 + $0x38] sm:$0xff]  ;;  %v63_v14 = vld [vmem:[#allocation5 + $0x40] sm:$0xff]  ;;  %v64_v15 = vld [vmem:[#allocation5 + $0x48] sm:$0xff]  ;;  %s288_s13 = scalar_lea.vmem %s150_s12, 128  ;;  %p293_p3 = scmp.lt.s32.totalorder %s150_s12, %s150_s12 }
  0x2a   :  { %214 = vmatpush3.bf16.msra.mxu0 %v213_v5  ;;  %v222_v13 = vpack.c.bf16 %v62_v12, %v61_v11  ;;  %v225_v16 = vpack.c.bf16 %v64_v15, %v63_v14  ;;  %v65_v17 = vld [vmem:[#allocation5 + $0x50] sm:$0xff]  ;;  %v66_v18 = vld [vmem:[#allocation5 + $0x58] sm:$0xff]  ;;  %v67_v20 = vld [vmem:[#allocation5 + $0x60] sm:$0xff]  ;;  %p289_p2 = scmp.ne.s32.totalorder %s150_s12, %s288_s13  ;;  %p294_p4 = scmp.lt.s32.totalorder %s288_s13, %s288_s13 }
  0x2b   :  { %215 = vmatprep.subr.bf16.mxu0 %v320_v0  ;;  %v228_v19 = vpack.c.bf16 %v66_v18, %v65_v17  ;;  %v68_v21 = vld [vmem:[#allocation5 + $0x68] sm:$0xff]  ;;  %v69_v23 = vld [vmem:[#allocation5 + $0x70] sm:$0xff]  ;;  %v70_v24 = vld [vmem:[#allocation5 + $0x78] sm:$0xff] }
  0x2c   :  { %v231_v22 = vpack.c.bf16 %v68_v21, %v67_v20  ;;  %v234_v25 = vpack.c.bf16 %v70_v24, %v69_v23  ;;  %v54_v26 = vld [vmem:[#allocation2] sm:$0xff]  ;;  %p295_p5 = por %p294_p4, %p293_p3 }
  0x2d   :  { %v159_v27 = vld [vmem:[%s392_s2] ss:$0 sm:$0xff] }
  0x2e   :  { %217 = vmatpush3.bf16.msra.mxu0 %v216_v7  ;;  %p296_p6 = pnand %p295_p5, %p289_p2 }
  0x2f   :  { %218 = vmatprep.subr.bf16.mxu0 %v320_v0 }
  0x32   :  { %220 = vmatpush3.bf16.msra.mxu0 %v219_v10 }
  0x33   :  { %221 = vmatprep.subr.bf16.mxu0 %v320_v0 }
  0x36   :  { %223 = vmatpush3.bf16.msra.mxu0 %v222_v13 }
  0x37   :  { %224 = vmatprep.subr.bf16.mxu0 %v320_v0 }
  0x3a   :  { %226 = vmatpush3.bf16.msra.mxu0 %v225_v16 }
  0x3b   :  { %227 = vmatprep.subr.bf16.mxu0 %v320_v0 }
  0x3e   :  { %229 = vmatpush3.bf16.msra.mxu0 %v228_v19 }
  0x3f   :  { %230 = vmatprep.subr.bf16.mxu0 %v320_v0 }
  0x42   :  { %232 = vmatpush3.bf16.msra.mxu0 %v231_v22 }
  0x43   :  { %233 = vmatprep.subr.bf16.mxu0 %v320_v0 }
  0x46   :  { %235 = vmatpush3.bf16.msra.mxu0 %v234_v25 }
  0x49   :  { %210 = vmatmul.mubr.f32.vlgmr.msra.gmra.mrb[0].mxu0 %v54_v26 }
 0x11c   :  { %v137_v28 = vpop.f32.mrb[0].mxu0 }
 0x11d   :  { %v141_v29 = vadd.f32 %v159_v27, %v137_v28  ;;  %v211_v30 = vpop.f32.mrb[1].mxu0 }
 0x11f   :  { %142 = vst [vmem:[#allocation7] sm:$0xff] %v141_v29 }
 0x120   :  { %299 = shalt.err (!%p296_p6)
}
 0x121   :  { %s300_s16 = scalar_lea.hbm %s393_s3, 128 }
 0x122   :  { %p301_p7 = scmp.ne.s32.totalorder %s393_s3, %s300_s16  ;;  %p304_p8 = scmp.lt.u32.totalorder %s300_s16, %s393_s3 }
 0x124   :  { %p306_p9 = pnand %p304_p8, %p301_p7 }
 0x126   :  { %309 = shalt.err (!%p306_p9)
}
 0x127   :  { %152 = dma.vmem_to_hbm [thread:$0]  %s150_s12, 128, %s393_s3, [#allocation4]  }
 0x128   :  { %314 = dma.done.wait [#allocation4], 128  }
 0x129   :  { %315 = vsyncadd [#allocation4], 4294967168 }
 0x12a   :  { %156 = vsyncpa [#allocation3], 1 }
 0x12b   :  { %157 = vsyncpa [#allocation6], 1 }
 0x12c   :  { %158 = vsyncpa [#allocation4], 1 }

</bundles_post_ra>
